<compile_context>
chip_gen: v6e
topology: v6e:2x2x1
jax: 0.10.0
libtpu: 0.0.40
codegen_flags: <defaults>
</compile_context>

<pallas_src>
import functools

import jax
import jax.numpy as jnp
from jax.experimental import pallas as pl
from jax.experimental.pallas import tpu as pltpu


def _round_up(x, m):
    return ((x + m - 1) // m) * m


def _cnn_fused_kernel(ids_ref,    # VMEM (TB, S_pad, 1) int32
                      table_ref,  # VMEM (vocab_pad, E) bf16
                      w_ref,      # VMEM (max_fs, E, F_pad) bf16
                      b_ref,      # VMEM (1, F_pad) f32
                      mask_ref,   # VMEM (S_cmp, F_pad) f32, 1.0 = valid position
                      o_ref):     # VMEM (TB, F_pad) f32
    tb, s_pad, _ = ids_ref.shape
    vocab, emb_dim = table_ref.shape
    max_fs = w_ref.shape[0]
    f_pad = w_ref.shape[2]
    s = mask_ref.shape[0]                  # conv positions computed per row

    # ---- Fused embedding gather as a one-hot matmul on the MXU -----------
    # Padded ids are -1, which matches no iota value -> exact zero rows.
    # TODO(synk): for very large vocabularies keep the table in HBM (pl.ANY)
    # and gather rows with pltpu.make_async_copy instead of a VMEM table.
    ids = ids_ref[...]                                            # (TB,S_pad,1)
    iota = jax.lax.broadcasted_iota(jnp.int32, (tb, s_pad, vocab), 2)
    one_hot = (ids == iota).astype(jnp.bfloat16)                  # (TB,S_pad,V)
    emb = jnp.dot(one_hot.reshape(tb * s_pad, vocab), table_ref[...],
                  preferred_element_type=jnp.float32)             # exact bf16 rows
    emb3 = emb.astype(jnp.bfloat16).reshape(tb, s_pad, emb_dim)   # (TB,S_pad,E)

    # ---- "valid" conv == sum over taps of shifted (TB*S, E) @ (E, F_pad) --
    acc = jnp.zeros((tb * s, f_pad), jnp.float32)
    for i in range(max_fs):
        x_i = emb3[:, i:i + s, :].reshape(tb * s, emb_dim)
        acc = acc + jnp.dot(x_i, w_ref[i], preferred_element_type=jnp.float32)

    # ---- bias + ReLU + masked max-pool over time (single lane-dense store) -
    y = jnp.maximum(acc + b_ref[...], 0.0)                        # (TB*S, F_pad)
    y3 = y.reshape(tb, s, f_pad) * mask_ref[...][None]            # zero invalid t
    o_ref[...] = jnp.max(y3, axis=1)                              # (TB, F_pad)


def cnn_net_forward(text, embed_table, conv_weights, conv_biases,
                    filter_sizes, *, block_b=None):
    """text: (B, S) int token ids; embed_table: (vocab, E) f32.
    conv_weights[i]: (n_filters_i, 1, fs_i, E); conv_biases[i]: (n_filters_i,).
    Returns (B, sum(n_filters_i)) f32. Dropout is identity (eval mode)."""
    B, S = text.shape
    vocab, E = embed_table.shape
    n_filters = [int(w.shape[0]) for w in conv_weights]
    f_total = sum(n_filters)
    f_pad = max(128, _round_up(f_total, 128))      # lane-dense filter axis
    max_fs = max(filter_sizes)
    s_cmp = _round_up(S, 8)                        # conv positions computed
    s_pad = _round_up(s_cmp + max_fs - 1, 8)       # padded time extent
    vocab_pad = _round_up(vocab, 8)

    # Batch rows per grid step: aim for TB*S ~ 512 MXU rows; keep the output
    # block sublane-friendly (multiple of 8) whenever the grid has >1 step.
    if block_b is None:
        block_b = min(B, max(1, 512 // max(s_cmp, 1)))
        if block_b < B:
            block_b = max(8, block_b - block_b % 8)
    b_pad = _round_up(B, block_b)

    # Token ids padded with -1 (matches no table row -> zero embedding).
    ids = text.astype(jnp.int32)
    ids = jnp.pad(ids, ((0, b_pad - B), (0, s_pad - S)), constant_values=-1)
    ids3 = ids[:, :, None]                                        # (b_pad,S_pad,1)

    # bf16 operands for the MXU (accumulation stays f32 inside the kernel).
    table_bf = jnp.zeros((vocab_pad, E), jnp.bfloat16).at[:vocab].set(
        embed_table.astype(jnp.bfloat16))

    # Pack all branches into per-tap weights with a zero-padded filter axis.
    w_taps = jnp.zeros((max_fs, E, f_pad), jnp.bfloat16)
    bias_row = jnp.zeros((1, f_pad), jnp.float32)
    valid_mask = jnp.zeros((s_cmp, f_pad), jnp.float32)
    col = 0
    for fs, w, b in zip(filter_sizes, conv_weights, conv_biases):
        nf = w.shape[0]
        wr = w.reshape(nf, fs, E).astype(jnp.bfloat16)            # in_ch == 1
        for i in range(fs):
            w_taps = w_taps.at[i, :, col:col + nf].set(wr[:, i, :].T)
        bias_row = bias_row.at[0, col:col + nf].set(b.astype(jnp.float32))
        valid_mask = valid_mask.at[:S - fs + 1, col:col + nf].set(1.0)
        col += nf

    grid = (b_pad // block_b,)
    flops = (2 * b_pad * s_pad * vocab_pad * E
             + 2 * b_pad * s_cmp * E * f_pad * max_fs)
    bytes_accessed = (ids3.size * 4 + table_bf.size * 2 + w_taps.size * 2
                      + bias_row.size * 4 + valid_mask.size * 4
                      + b_pad * f_pad * 4)

    out = pl.pallas_call(
        _cnn_fused_kernel,
        out_shape=jax.ShapeDtypeStruct((b_pad, f_pad), jnp.float32),
        grid_spec=pltpu.PrefetchScalarGridSpec(
            num_scalar_prefetch=0,
            grid=grid,
            in_specs=[
                pl.BlockSpec((block_b, s_pad, 1), lambda b: (b, 0, 0)),
                pl.BlockSpec((vocab_pad, E), lambda b: (0, 0)),
                pl.BlockSpec((max_fs, E, f_pad), lambda b: (0, 0, 0)),
                pl.BlockSpec((1, f_pad), lambda b: (0, 0)),
                pl.BlockSpec((s_cmp, f_pad), lambda b: (0, 0)),
            ],
            out_specs=pl.BlockSpec((block_b, f_pad), lambda b: (b, 0)),
        ),
        compiler_params=pltpu.CompilerParams(
            dimension_semantics=("parallel",),
            vmem_limit_bytes=64 * 1024 * 1024,
        ),
        cost_estimate=pl.CostEstimate(
            flops=flops, transcendentals=0, bytes_accessed=bytes_accessed),
    )(ids3, table_bf, w_taps, bias_row, valid_mask)

    # Dropout in eval mode is identity.
    # TODO(synk): training-mode dropout (PRNG mask) not implemented.
    return out[:B, :f_total]


if __name__ == "__main__":
    key = jax.random.PRNGKey(0)

    batch = 2
    seq_len = 8
    embed_size = 32
    vocab_size = 22          # 20 "real" words + pad + unknown
    n_filters = 8
    filter_sizes = (2, 3, 4)

    k_emb, k_txt, *k_ws = jax.random.split(key, 2 + 2 * len(filter_sizes))

    # Embedding table: rows 0 (pad) and 1 (unknown) are zeros, like the module.
    embed_body = jax.random.normal(k_emb, (vocab_size - 2, embed_size),
                                   dtype=jnp.float32) * 0.1
    embed_table = jnp.concatenate(
        [jnp.zeros((2, embed_size), jnp.float32), embed_body], axis=0)

    # Deterministic conv weights/biases (Conv2d(1, n_filters, (fs, E))).
    conv_weights, conv_biases = [], []
    for i, fs in enumerate(filter_sizes):
        kw, kb = k_ws[2 * i], k_ws[2 * i + 1]
        w = jax.random.normal(kw, (n_filters, 1, fs, embed_size),
                              dtype=jnp.float32) * 0.05
        b = jax.random.normal(kb, (n_filters,), dtype=jnp.float32) * 0.01
        conv_weights.append(w)
        conv_biases.append(b)

    # Token ids in [2, vocab_size) plus a pad token for coverage.
    text = jax.random.randint(k_txt, (batch, seq_len), 2, vocab_size,
                              dtype=jnp.int32)
    text = text.at[0, -1].set(0)  # pad token

    fwd = jax.jit(functools.partial(cnn_net_forward,
                                    filter_sizes=filter_sizes))
    out = fwd(text, embed_table, conv_weights, conv_biases)
    out = jax.block_until_ready(out)

    expected_shape = (batch, n_filters * len(filter_sizes))
    assert out.shape == expected_shape, (out.shape, expected_shape)
    assert out.dtype == jnp.float32

    # Pure-JAX reference with the same bf16 rounding of emb/weights, f32 accum.
    table_bf = embed_table.astype(jnp.bfloat16).astype(jnp.float32)
    emb_ref = jnp.take(table_bf, text, axis=0)                   # (B, S, E)
    ref_pooled = []
    for fs, w, b in zip(filter_sizes, conv_weights, conv_biases):
        s_out = seq_len - fs + 1
        win = jnp.stack([emb_ref[:, i:i + s_out, :] for i in range(fs)],
                        axis=2).reshape(batch, s_out, fs * embed_size)
        w_bf = w.reshape(n_filters, fs * embed_size).astype(
            jnp.bfloat16).astype(jnp.float32)
        y = jnp.einsum('btk,fk->btf', win, w_bf,
                       precision=jax.lax.Precision.HIGHEST) + b
        ref_pooled.append(jnp.max(jax.nn.relu(y), axis=1))
    ref = jnp.concatenate(ref_pooled, axis=1)
    assert jnp.allclose(out, ref, atol=1e-4, rtol=1e-3), (
        float(jnp.max(jnp.abs(out - ref))))

    print("KERNEL_OK")
</pallas_src>

<mosaic_0001>
module attributes {stable_mosaic.version = 11 : i64} {
  func.func @_cnn_fused_kernel(%arg0: i32, %arg1: memref<2x16x1xi32, #tpu.memory_space<vmem>>, %arg2: memref<24x32xbf16, #tpu.memory_space<vmem>>, %arg3: memref<4x32x128xbf16, #tpu.memory_space<vmem>>, %arg4: memref<1x128xf32, #tpu.memory_space<vmem>>, %arg5: memref<8x128xf32, #tpu.memory_space<vmem>>, %arg6: memref<2x128xf32, #tpu.memory_space<vmem>>) attributes {dimension_semantics = [#tpu.dimension_semantics<parallel>], iteration_bounds = array<i64: 1>, scalar_prefetch = 0 : i64, scratch_operands = 0 : i64, tpu.core_type = #tpu.core_type<tc>, window_params = [{transform_indices = @transform_0, window_bounds = array<i64: 2, 16, 1>}, {pipeline_mode = #tpu.pipeline_mode<synchronous>, transform_indices = @transform_1, window_bounds = array<i64: 24, 32>}, {pipeline_mode = #tpu.pipeline_mode<synchronous>, transform_indices = @transform_2, window_bounds = array<i64: 4, 32, 128>}, {pipeline_mode = #tpu.pipeline_mode<synchronous>, transform_indices = @transform_3, window_bounds = array<i64: 1, 128>}, {pipeline_mode = #tpu.pipeline_mode<synchronous>, transform_indices = @transform_4, window_bounds = array<i64: 8, 128>}, {transform_indices = @transform_5, window_bounds = array<i64: 2, 128>}]} {
    %c0 = arith.constant 0 : index
    %c0_0 = arith.constant 0 : index
    %c0_1 = arith.constant 0 : index
    %0 = vector.load %arg1[%c0, %c0_0, %c0_1] : memref<2x16x1xi32, #tpu.memory_space<vmem>>, vector<2x16x1xi32>
    %1 = tpu.iota {dimensions = array<i32: 2>} : vector<2x16x24xi32>
    %2 = vector.broadcast %0 : vector<2x16x1xi32> to vector<2x16x24xi32>
    %3 = arith.cmpi eq, %2, %1 : vector<2x16x24xi32>
    %4 = arith.extui %3 : vector<2x16x24xi1> to vector<2x16x24xi32>
    %5 = arith.sitofp %4 : vector<2x16x24xi32> to vector<2x16x24xf32>
    %6 = arith.truncf %5 : vector<2x16x24xf32> to vector<2x16x24xbf16>
    %7 = vector.shape_cast %6 : vector<2x16x24xbf16> to vector<32x24xbf16>
    %c0_2 = arith.constant 0 : index
    %c0_3 = arith.constant 0 : index
    %8 = vector.load %arg2[%c0_2, %c0_3] : memref<24x32xbf16, #tpu.memory_space<vmem>>, vector<24x32xbf16>
    %cst = arith.constant dense<0.000000e+00> : vector<32x32xf32>
    %9 = tpu.matmul %7, %8, %cst {dimension_numbers = #tpu.dot_dimension_numbers<[1], [0], [0], [1], [0, 0, 1, 1], [], []>} : vector<32x24xbf16>, vector<24x32xbf16>, vector<32x32xf32> -> vector<32x32xf32>
    %10 = arith.truncf %9 : vector<32x32xf32> to vector<32x32xbf16>
    %11 = vector.shape_cast %10 : vector<32x32xbf16> to vector<2x16x32xbf16>
    %cst_4 = arith.constant 0.000000e+00 : f32
    %12 = vector.broadcast %cst_4 : f32 to vector<16x128xf32>
    %13 = vector.extract_strided_slice %11 {offsets = [0, 0, 0], sizes = [2, 8, 32], strides = [1, 1, 1]} : vector<2x16x32xbf16> to vector<2x8x32xbf16>
    %14 = vector.shape_cast %13 : vector<2x8x32xbf16> to vector<16x32xbf16>
    %c0_5 = arith.constant 0 : index
    %c0_6 = arith.constant 0 : index
    %c0_7 = arith.constant 0 : index
    %15 = vector.load %arg3[%c0_5, %c0_6, %c0_7] : memref<4x32x128xbf16, #tpu.memory_space<vmem>>, vector<1x32x128xbf16>
    %16 = vector.shape_cast %15 : vector<1x32x128xbf16> to vector<32x128xbf16>
    %cst_8 = arith.constant dense<0.000000e+00> : vector<16x128xf32>
    %17 = tpu.matmul %14, %16, %cst_8 {dimension_numbers = #tpu.dot_dimension_numbers<[1], [0], [0], [1], [0, 0, 1, 1], [], []>} : vector<16x32xbf16>, vector<32x128xbf16>, vector<16x128xf32> -> vector<16x128xf32>
    %18 = arith.addf %12, %17 : vector<16x128xf32>
    %19 = vector.extract_strided_slice %11 {offsets = [0, 1, 0], sizes = [2, 8, 32], strides = [1, 1, 1]} : vector<2x16x32xbf16> to vector<2x8x32xbf16>
    %20 = vector.shape_cast %19 : vector<2x8x32xbf16> to vector<16x32xbf16>
    %c1 = arith.constant 1 : index
    %c0_9 = arith.constant 0 : index
    %c0_10 = arith.constant 0 : index
    %21 = vector.load %arg3[%c1, %c0_9, %c0_10] : memref<4x32x128xbf16, #tpu.memory_space<vmem>>, vector<1x32x128xbf16>
    %22 = vector.shape_cast %21 : vector<1x32x128xbf16> to vector<32x128xbf16>
    %cst_11 = arith.constant dense<0.000000e+00> : vector<16x128xf32>
    %23 = tpu.matmul %20, %22, %cst_11 {dimension_numbers = #tpu.dot_dimension_numbers<[1], [0], [0], [1], [0, 0, 1, 1], [], []>} : vector<16x32xbf16>, vector<32x128xbf16>, vector<16x128xf32> -> vector<16x128xf32>
    %24 = arith.addf %18, %23 : vector<16x128xf32>
    %25 = vector.extract_strided_slice %11 {offsets = [0, 2, 0], sizes = [2, 8, 32], strides = [1, 1, 1]} : vector<2x16x32xbf16> to vector<2x8x32xbf16>
    %26 = vector.shape_cast %25 : vector<2x8x32xbf16> to vector<16x32xbf16>
    %c2 = arith.constant 2 : index
    %c0_12 = arith.constant 0 : index
    %c0_13 = arith.constant 0 : index
    %27 = vector.load %arg3[%c2, %c0_12, %c0_13] : memref<4x32x128xbf16, #tpu.memory_space<vmem>>, vector<1x32x128xbf16>
    %28 = vector.shape_cast %27 : vector<1x32x128xbf16> to vector<32x128xbf16>
    %cst_14 = arith.constant dense<0.000000e+00> : vector<16x128xf32>
    %29 = tpu.matmul %26, %28, %cst_14 {dimension_numbers = #tpu.dot_dimension_numbers<[1], [0], [0], [1], [0, 0, 1, 1], [], []>} : vector<16x32xbf16>, vector<32x128xbf16>, vector<16x128xf32> -> vector<16x128xf32>
    %30 = arith.addf %24, %29 : vector<16x128xf32>
    %31 = vector.extract_strided_slice %11 {offsets = [0, 3, 0], sizes = [2, 8, 32], strides = [1, 1, 1]} : vector<2x16x32xbf16> to vector<2x8x32xbf16>
    %32 = vector.shape_cast %31 : vector<2x8x32xbf16> to vector<16x32xbf16>
    %c3 = arith.constant 3 : index
    %c0_15 = arith.constant 0 : index
    %c0_16 = arith.constant 0 : index
    %33 = vector.load %arg3[%c3, %c0_15, %c0_16] : memref<4x32x128xbf16, #tpu.memory_space<vmem>>, vector<1x32x128xbf16>
    %34 = vector.shape_cast %33 : vector<1x32x128xbf16> to vector<32x128xbf16>
    %cst_17 = arith.constant dense<0.000000e+00> : vector<16x128xf32>
    %35 = tpu.matmul %32, %34, %cst_17 {dimension_numbers = #tpu.dot_dimension_numbers<[1], [0], [0], [1], [0, 0, 1, 1], [], []>} : vector<16x32xbf16>, vector<32x128xbf16>, vector<16x128xf32> -> vector<16x128xf32>
    %36 = arith.addf %30, %35 : vector<16x128xf32>
    %c0_18 = arith.constant 0 : index
    %c0_19 = arith.constant 0 : index
    %37 = vector.load %arg4[%c0_18, %c0_19] : memref<1x128xf32, #tpu.memory_space<vmem>>, vector<1x128xf32>
    %38 = vector.broadcast %37 : vector<1x128xf32> to vector<16x128xf32>
    %39 = arith.addf %36, %38 : vector<16x128xf32>
    %cst_20 = arith.constant 0.000000e+00 : f32
    %40 = vector.broadcast %cst_20 : f32 to vector<16x128xf32>
    %41 = arith.maximumf %39, %40 : vector<16x128xf32>
    %42 = vector.shape_cast %41 : vector<16x128xf32> to vector<2x8x128xf32>
    %c0_21 = arith.constant 0 : index
    %c0_22 = arith.constant 0 : index
    %43 = vector.load %arg5[%c0_21, %c0_22] : memref<8x128xf32, #tpu.memory_space<vmem>>, vector<8x128xf32>
    %44 = vector.shape_cast %43 : vector<8x128xf32> to vector<1x8x128xf32>
    %45 = vector.broadcast %44 : vector<1x8x128xf32> to vector<2x8x128xf32>
    %46 = arith.mulf %42, %45 : vector<2x8x128xf32>
    %cst_23 = arith.constant dense<0xFF800000> : vector<2x128xf32>
    %47 = vector.multi_reduction <maximumf>, %46, %cst_23 [1] : vector<2x8x128xf32> to vector<2x128xf32>
    %c0_24 = arith.constant 0 : index
    %c0_25 = arith.constant 0 : index
    %48 = vector.load %arg6[%c0_24, %c0_25] : memref<2x128xf32, #tpu.memory_space<vmem>>, vector<2x128xf32>
    tpu.vector_store %arg6[%c0_24, %c0_25], %47 {strides = array<i32>} : memref<2x128xf32, #tpu.memory_space<vmem>>, vector<2x128xf32>,
    return
  }
  func.func @transform_0(%arg0: i32) -> (i32, i32, i32) {
    %c0_i32 = arith.constant 0 : i32
    %c0_i32_0 = arith.constant 0 : i32
    %c0_i32_1 = arith.constant 0 : i32
    return %arg0, %c0_i32, %c0_i32_0 : i32, i32, i32
  }
  func.func @transform_1(%arg0: i32) -> (i32, i32) {
    %c0_i32 = arith.constant 0 : i32
    %c0_i32_0 = arith.constant 0 : i32
    %c0_i32_1 = arith.constant 0 : i32
    return %c0_i32, %c0_i32_0 : i32, i32
  }
  func.func @transform_2(%arg0: i32) -> (i32, i32, i32) {
    %c0_i32 = arith.constant 0 : i32
    %c0_i32_0 = arith.constant 0 : i32
    %c0_i32_1 = arith.constant 0 : i32
    %c0_i32_2 = arith.constant 0 : i32
    return %c0_i32, %c0_i32_0, %c0_i32_1 : i32, i32, i32
  }
  func.func @transform_3(%arg0: i32) -> (i32, i32) {
    %c0_i32 = arith.constant 0 : i32
    %c0_i32_0 = arith.constant 0 : i32
    %c0_i32_1 = arith.constant 0 : i32
    return %c0_i32, %c0_i32_0 : i32, i32
  }
  func.func @transform_4(%arg0: i32) -> (i32, i32) {
    %c0_i32 = arith.constant 0 : i32
    %c0_i32_0 = arith.constant 0 : i32
    %c0_i32_1 = arith.constant 0 : i32
    return %c0_i32, %c0_i32_0 : i32, i32
  }
  func.func @transform_5(%arg0: i32) -> (i32, i32) {
    %c0_i32 = arith.constant 0 : i32
    %c0_i32_0 = arith.constant 0 : i32
    return %arg0, %c0_i32 : i32, i32
  }
}

</mosaic_0001>

<bundles_post_ra>
// kernel: cnn_net_forward.1
= control target key start
LH: loop header
LB: loop body
LE: loop exit
PB: predicated region body
PF: predicated region fallthrough
CT: control target
= control target key end

     0   :  { %vm73_vm0 = vcmask 1043456   ;;  %v650_v2 = vmov 0   ;;  %v651_v8 = vmov 0.0   ;;  %s777_s0 = inlined_call_operand.vmem [shape: s32[2,16,1], index: 0, kind: input, shape index: {}]   ;;  %s778_s1 = inlined_call_operand.vmem [shape: bf16[24,32], index: 1, kind: input, shape index: {}]   ;;  %s779_s2 = inlined_call_operand.vmem [shape: bf16[4,32,128], index: 2, kind: input, shape index: {}]   ;;  %s780_s3 = inlined_call_operand.vmem [shape: f32[1,128], index: 3, kind: input, shape index: {}]   ;;  %s781_s4 = inlined_call_operand.vmem [shape: f32[8,128], index: 4, kind: input, shape index: {}]   ;;  %s782_s5 = inlined_call_operand.hbm [shape: f32[2,128], index: 5, kind: output, shape index: {}]  }
   0x1   :  { %v24_v0 = vld [vmem:[%s777_s0 + $0x10] sm:$0xff]  ;;  %v22_v1 = vld [vmem:[%s777_s0] sm:$0xff]  ;;  %617 = vset.pattern.permute.xlu1 %v650_v2  ;;  %616 = vset.pattern.permute.xlu0 %v650_v2  ;;  %v25_v3 = vld [vmem:[%s777_s0 + $0x18] sm:$0xff] }
   0x2   :  { %v618_v4 = vld [vmem:[%s778_s1 + $0x8] ss:$0 sps:$4 sm:$0xff]   ;;  %35 = vperm.xlu1 %617, %v24_v0   ;;  %29 = vperm.xlu0 %616, %v22_v1   ;;  %v619_v5 = vld [vmem:[%s778_s1] sm:$0xff]  }
   0x3   :  { %v23_v6 = vld [vmem:[%s777_s0 + $0x8] sm:$0xff]  ;;  %611 = vmatprep.subr.msk.bf16.mxu0 %vm73_vm0, %v618_v4  ;;  %v75_v7 = vsel %vm73_vm0, %v618_v4, 0  ;;  %579 = vmatprep.subr.bf16.mxu1 %v651_v8 }
   0x4   :  { %572 = vmatpush3.bf16.msra.mxu0 %v75_v7 }
   0x5   :  { %573 = vmatprep.subr.bf16.mxu0 %v619_v5 }
   0x6   :  { %38 = vperm.xlu1 %617, %v25_v3   ;;  %32 = vperm.xlu0 %616, %v23_v6  }
   0x8   :  { %574 = vmatpush3.bf16.msra.mxu0 %v619_v5 }
   0x9   :  { %587 = vmatprep.subr.bf16.mxu0 %v651_v8 }
   0xa   :  { %10 = vsyncpa [#allocation3], 0  ;;  %v26_v9 = vlaneseq  ;;  %vm66_vm5 = vcmask 195584   ;;  %v620_v21 = vld [vmem:[%s779_s2 + $0x8] sm:$0xff]   ;;  %v621_v22 = vld [vmem:[%s779_s2] sm:$0xff]   ;;  %vm652_vm6 = vmmov 0  }
   0xb   :  { %583 = vmatprep.mubr.msk.bf16.mxu1 %vm652_vm6, %v651_v8  ;;  %v622_v23 = vld [vmem:[%s779_s2 + $0x18] sm:$0xff]   ;;  %v624_v24 = vld [vmem:[%s779_s2 + $0x10] sm:$0xff]   ;;  %vm193_vm7 = vcmask 261120   ;;  %vm142_vm8 = vsmask.f32 3328  ;;  %v626_v1 = vld [vmem:[%s779_s2 + $0x28] sm:$0xff]  }
   0xc   :  { %v27_v10 = vand.u32 127, %v26_v9  ;;  %580 = vmatpush3.bf16.msra.mxu1 %v622_v23  ;;  %v623_v31 = vld [vmem:[%s779_s2 + $0x38] sm:$0xff]   ;;  %v625_v42 = vld [vmem:[%s779_s2 + $0x30] sm:$0xff]   ;;  %vm143_vm9 = vsmask.f32 7440  ;;  %vm295_vm13 = vcmask 1042432  }
   0xd   :  { %581 = vmatprep.subr.bf16.mxu1 %v651_v8  ;;  %vm372_vm10 = vsmask.f32 2304  ;;  %vm144_vm11 = vmor %vm142_vm8, %vm143_vm9  ;;  %vm373_vm12 = vsmask.f32 6416  ;;  %vm296_vm14 = vcmask 1046532  }
   0xe   :  { %vm374_vm15 = vmor %vm372_vm10, %vm373_vm12 }
   0xf   :  { %vm297_vm0 = vmor %vm295_vm13, %vm296_vm14 }
  0x10   :  { %582 = vmatpush3.bf16.msra.mxu1 %v624_v24 }
  0x11   :  { %595 = vmatprep.subr.bf16.mxu1 %v651_v8 }
  0x7d   :  { %v36_v11 = vpop.permute.xlu1 %35  ;;  %v30_v12 = vpop.permute.xlu0 %29 }
  0x7e   :  { %vm42_vm1 = vcmp.eq.s32.totalorder %v36_v11, %v27_v10  ;;  %vm40_vm2 = vcmp.eq.s32.totalorder %v30_v12, %v27_v10  ;;  %v627_v12 = vld [vmem:[%s779_s2 + $0x20] sm:$0xff]  }
  0x7f   :  { %v509_v15 = vsel %vm42_vm1, 1.0, %v651_v8  ;;  %v507_v16 = vsel %vm40_vm2, 1.0, %v651_v8  ;;  %vm489_vm1 = vcmask 1041409  }
  0x81   :  { %v39_v13 = vpop.permute.xlu1 %38  ;;  %v33_v14 = vpop.permute.xlu0 %32 }
  0x82   :  { %vm43_vm3 = vcmp.eq.s32.totalorder %v39_v13, %v27_v10  ;;  %vm41_vm4 = vcmp.eq.s32.totalorder %v33_v14, %v27_v10 }
  0x83   :  { %v510_v17 = vsel %vm43_vm3, 1.0, %v651_v8  ;;  %v508_v18 = vsel %vm41_vm4, 1.0, %v651_v8 }
  0x84   :  { %v53_v19 = vpack.c.bf16 %v510_v17, %v509_v15  ;;  %v52_v20 = vpack.c.bf16 %v508_v18, %v507_v16 }
  0x86   :  { %575 = vmatprep.mubr.msk.bf16.mxu0 %vm66_vm5, %v52_v20 }
  0x87   :  { %576 = vmatmul.mubr.msk.bf16.vlgmr.msra.gmra.mxu0 %vm66_vm5, %v53_v19 }
  0x88   :  { %588 = vmatpush3.bf16.msra.mxu0 %v620_v21  ;;  %591 = vmatprep.mubr.msk.bf16.mxu0 %vm652_vm6, %v651_v8 }
  0x89   :  { %589 = vmatprep.subr.bf16.mxu0 %v651_v8 }
  0x8c   :  { %590 = vmatpush3.bf16.msra.mxu0 %v621_v22 }
  0x8d   :  { %603 = vmatprep.subr.bf16.mxu0 %v651_v8 }
 0x147   :  { %v577_v25 = vpop.f32.mrf.mxu0 }
 0x148   :  { %v728_v26 = vpack.c.bf16 %v577_v25, %v577_v25 }
 0x149   :  { %v111_v27 = vpop.f32.mrf.mxu0 }
 0x14a   :  { %v160_v28 = vshrl.u32 %v728_v26, 16  ;;  %v163_v29 = vshll.u32 %v728_v26, 16  ;;  %v732_v30 = vpack.c.bf16 %v111_v27, %v111_v27  ;;  %v554_v32 = vpack.c.bf16 %v577_v25, %v111_v27 }
 0x14b   :  { %v578_v33 = vpop.f32.mrf.mxu0  ;;  %v532_v15 = vrot.slane %v728_v26, 9 }
 0x14c   :  { %v162_v34 = vrot.slane %v160_v28, 4  ;;  %v165_v35 = vrot.slane %v163_v29, 5  ;;  %v146_v36 = vshrl.u32 %v732_v30, 16  ;;  %v149_v37 = vshll.u32 %v732_v30, 16  ;;  %592 = vmatmul.mubr.msk.bf16.vlgmr.msra.gmra.mxu0 %vm193_vm7, %v554_v32 }
 0x14d   :  { %v739_v38 = vpack.c.bf16 %v578_v33, %v578_v33  ;;  %v114_v39 = vpop.f32.mrf.mxu0  ;;  %604 = vmatpush3.bf16.msra.mxu0 %v623_v31  ;;  %607 = vmatprep.mubr.msk.bf16.mxu0 %vm652_vm6, %v651_v8  ;;  %v385_v43 = vrot.slane %v160_v28, 5  ;;  %v386_v46 = vrot.slane %v163_v29, 6  ;;  %v531_v10 = vrot.slane %v732_v30, 9  ;;  %v549_v33 = vld [vmem:[%s780_s3] ss:$0 sm:$0xff]  ;;  %s653_s3 = smov [#allocation2]  }
 0x14e   :  { %v166_v40 = vor.u32 %v165_v35, %v162_v34  ;;  %v551_v41 = vpack.c.bf16 %v114_v39, %v114_v39  ;;  %v148_v44 = vrot.slane %v146_v36, 4  ;;  %v151_v45 = vrot.slane %v149_v37, 5  ;;  %605 = vmatprep.subr.bf16.mxu0 %v651_v8  ;;  %s499_s22 = sshll.u32 %s653_s3, 4  ;;  %s500_s22 = int_to_ptr.vmem [resolvable:$true] %s499_s22 }
 0x14f   :  { %v375_v47 = vrot.slane %v146_v36, 5  ;;  %v376_v48 = vrot.slane %v149_v37, 6  ;;  %v169_v49 = vshll.u32 %v739_v38, 16  ;;  %v389_v52 = vshrl.u32 %v739_v38, 16  ;;  %p633_p1 = scmp.lt.s32.totalorder %s500_s22, %s500_s22 }
 0x150   :  { %v167_v50 = vrot.slane %v166_v40, 4  ;;  %v152_v51 = vor.u32 %v151_v45, %v148_v44  ;;  %v155_v53 = vshll.u32 %v551_v41, 16  ;;  %v387_v59 = vor.u32 %v386_v46, %v385_v43 }
 0x151   :  { %v171_v54 = vrot.slane %v169_v49, 5  ;;  %v392_v55 = vrot.slane %v169_v49, 6  ;;  %606 = vmatpush3.bf16.msra.mxu0 %v625_v42  ;;  %v391_v57 = vrot.slane %v389_v52, 5  ;;  %v377_v60 = vor.u32 %v376_v48, %v375_v47 }
 0x152   :  { %v153_v56 = vrot.slane %v152_v51, 4  ;;  %v157_v58 = vrot.slane %v155_v53, 5  ;;  %v379_v61 = vshrl.u32 %v551_v41, 16  ;;  %v382_v62 = vrot.slane %v155_v53, 6 }
 0x153   :  { %v172_v0 = vsel %vm144_vm11, %v167_v50, %v171_v54  ;;  %v393_v2 = vor.u32 %v392_v55, %v391_v57  ;;  %v300_v5 = vrot.slane %v551_v41, 5  ;;  %v388_v6 = vrot.slane %v387_v59, 4  ;;  %v472_v41 = vld [vmem:[%s781_s4] sm:$0xff]  ;;  %s628_s4 = scalar_lea.vmem %s500_s22, 32 }
 0x154   :  { %v158_v63 = vsel %vm144_vm11, %v153_v56, %v157_v58  ;;  %v381_v3 = vrot.slane %v379_v61, 5  ;;  %v378_v7 = vrot.slane %v377_v60, 4  ;;  %v304_v11 = vrot.slane %v739_v38, 5  ;;  %p629_p0 = scmp.ne.s32.totalorder %s500_s22, %s628_s4  ;;  %p634_p2 = scmp.lt.s32.totalorder %s628_s4, %s628_s4 }
 0x155   :  { %v523_v4 = vcombine.low %v158_v63, %v172_v0  ;;  %v394_v13 = vsel %vm374_vm15, %v388_v6, %v393_v2  ;;  %v301_v16 = vsel %vm297_vm0, %v531_v10, %v300_v5 }
 0x156   :  { %v383_v9 = vor.u32 %v382_v62, %v381_v3  ;;  %v305_v18 = vsel %vm297_vm0, %v532_v15, %v304_v11  ;;  %p635_p3 = por %p634_p2, %p633_p1 }
 0x157   :  { %584 = vmatmul.mubr.msk.bf16.vlgmr.msra.gmra.mxu1 %vm193_vm7, %v523_v4  ;;  %v537_v19 = vcombine.low %v301_v16, %v305_v18 }
 0x158   :  { %596 = vmatpush3.bf16.msra.mxu1 %v626_v1  ;;  %599 = vmatprep.mubr.msk.bf16.mxu1 %vm652_vm6, %v651_v8  ;;  %v384_v14 = vsel %vm374_vm15, %v378_v7, %v383_v9  ;;  %p636_p4 = pnand %p635_p3, %p629_p0 }
 0x159   :  { %597 = vmatprep.subr.bf16.mxu1 %v651_v8  ;;  %v545_v17 = vcombine.low %v384_v14, %v394_v13 }
 0x15b   :  { %608 = vmatmul.mubr.msk.bf16.vlgmr.msra.gmra.mxu0 %vm193_vm7, %v545_v17 }
 0x15c   :  { %598 = vmatpush3.bf16.msra.mxu1 %v627_v12 }
 0x15f   :  { %600 = vmatmul.mubr.msk.bf16.vlgmr.msra.gmra.mxu1 %vm193_vm7, %v537_v19 }
 0x20c   :  { %v288_v20 = vpop.f32.mrf.mxu0 }
 0x20e   :  { %v593_v21 = vpop.f32.mrf.mxu0 }
 0x210   :  { %v291_v22 = vpop.f32.mrf.mxu0 }
 0x212   :  { %v594_v23 = vpop.f32.mrf.mxu0 }
 0x217   :  { %v231_v24 = vpop.f32.mrf.mxu1 }
 0x218   :  { %v289_v29 = vadd.f32 %v288_v20, %v231_v24 }
 0x219   :  { %v585_v25 = vpop.f32.mrf.mxu1 }
 0x21b   :  { %v234_v27 = vpop.f32.mrf.mxu1  ;;  %v452_v28 = vpop.f32.mrf.mxu0 }
 0x21c   :  { %v292_v35 = vadd.f32 %v291_v22, %v234_v27 }
 0x21d   :  { %v586_v8 = vpop.f32.mrf.mxu1  ;;  %v609_v26 = vpop.f32.mrf.mxu0 }
 0x21f   :  { %v363_v30 = vpop.f32.mrf.mxu1  ;;  %v455_v31 = vpop.f32.mrf.mxu0 }
 0x220   :  { %v370_v32 = vadd.f32 %v363_v30, %v289_v29 }
 0x221   :  { %v601_v34 = vpop.f32.mrf.mxu1  ;;  %v610_v37 = vpop.f32.mrf.mxu0 }
 0x222   :  { %v459_v36 = vadd.f32 %v452_v28, %v370_v32 }
 0x223   :  { %v366_v38 = vpop.f32.mrf.mxu1 }
 0x224   :  { %v468_v39 = vadd.f32 %v549_v33, %v459_v36  ;;  %v371_v40 = vadd.f32 %v366_v38, %v292_v35 }
 0x225   :  { %v602_v42 = vpop.f32.mrf.mxu1 }
 0x226   :  { %v470_v43 = vmax.f32 %v468_v39, 0.0  ;;  %v460_v44 = vadd.f32 %v455_v31, %v371_v40 }
 0x228   :  { %v473_v45 = vmul.f32 %v472_v41, %v470_v43  ;;  %v469_v46 = vadd.f32 %v549_v33, %v460_v44 }
 0x22a   :  { %v475_v47 = vrot.slane %v473_v45, 4  ;;  %v471_v48 = vmax.f32 %v469_v46, 0.0 }
 0x22c   :  { %v476_v49 = vmax.f32 %v473_v45, %v475_v47  ;;  %v474_v50 = vmul.f32 %v472_v41, %v471_v48 }
 0x22e   :  { %v481_v51 = vrot.slane %v474_v50, 4  ;;  %v477_v52 = vrot.slane %v476_v49, 2 }
 0x230   :  { %v482_v53 = vmax.f32 %v474_v50, %v481_v51  ;;  %v478_v54 = vmax.f32 %v476_v49, %v477_v52 }
 0x232   :  { %v483_v55 = vrot.slane %v482_v53, 2  ;;  %v479_v56 = vrot.slane %v478_v54, 1 }
 0x234   :  { %v484_v57 = vmax.f32 %v482_v53, %v483_v55  ;;  %v480_v59 = vmax.f32 %v478_v54, %v479_v56 }
 0x236   :  { %v485_v58 = vrot.slane %v484_v57, 1 }
 0x238   :  { %v486_v60 = vmax.f32 %v484_v57, %v485_v58 }
 0x23a   :  { %v490_v61 = vsel %vm489_vm1, %v486_v60, %v480_v59 }
 0x23b   :  { %492 = vst [vmem:[#allocation2] sm:$0x3] %v490_v61 }
 0x23c   :  { %639 = shalt.err (!%p636_p4)
}
 0x23d   :  { %502 = dma.vmem_to_hbm [thread:$0]  %s500_s22, 32, %s782_s5, [#allocation3]  }
 0x23e   :  { %648 = dma.done.wait [#allocation3], 32  }
 0x23f   :  { %649 = vsyncadd [#allocation3], 4294967264 }
 0x240   :  { %506 = vsyncpa [#allocation3], 1 }

</bundles_post_ra>
